<compile_context>
chip_gen: v5e
topology: v5e:2x2
jax: 0.10.0
libtpu: 0.0.40
codegen_flags: <defaults>
</compile_context>

<pallas_src>
import jax
import jax.numpy as jnp
from jax.experimental import pallas as pl
from jax.experimental.pallas import tpu as pltpu


def gaf_kernel(xd_ref, xi_ref, wd_ref, wi_ref, bd_ref, bi_ref, o_ref):
    """One (nb, C, T) tile: out = xd*sigmoid(wd@xd+bd) + xi*sigmoid(wi@xi+bi)."""
    nb = xd_ref.shape[0]
    wd = wd_ref[...]                    # (C, C) resident 1x1-conv weights
    wi = wi_ref[...]
    bd = bd_ref[...]                    # (C, 1) bias, broadcasts along lanes
    bi = bi_ref[...]
    # nb is small and static (wrapper caps it) -> unrolled plain 2-D matmuls.
    for i in range(nb):
        xd = xd_ref[i]                  # (C, T) channels-first pixel slab
        xi = xi_ref[i]
        zd = jnp.dot(wd, xd, preferred_element_type=jnp.float32) + bd
        zi = jnp.dot(wi, xi, preferred_element_type=jnp.float32) + bi
        # sigmoid(z) == 0.5*tanh(0.5*z)+0.5: a single EUP transcendental per gate
        # element (instead of exp + reciprocal). Gate math stays in f32.
        gd = 0.5 * jnp.tanh(0.5 * zd) + 0.5
        gi = 0.5 * jnp.tanh(0.5 * zi) + 0.5
        out = xd.astype(jnp.float32) * gd + xi.astype(jnp.float32) * gi
        o_ref[i] = out.astype(o_ref.dtype)


def _largest_divisor_not_above(n, cap):
    cap = max(1, min(n, cap))
    for d in range(cap, 0, -1):
        if n % d == 0:
            return d
    return 1


def gaf_block(f_depth, f_inertial, w_depth, b_depth, w_inertial, b_inertial,
              *, target_tile_bytes=2 * 1024 * 1024, max_batch_block=16):
    """GAF_Block forward.

    f_depth, f_inertial: (N, C, H, W) float32 or bfloat16
    w_depth, w_inertial: (C, C) or raw PyTorch (C, C, 1, 1) 1x1-conv weights
    b_depth, b_inertial: (C,)
    Returns: (N, C, H, W) in the input dtype.
    """
    N, C, H, W = f_depth.shape
    HW = H * W
    dtype = f_depth.dtype
    elem = dtype.itemsize

    # Accept raw PyTorch conv weights (C_out, C_in, 1, 1) without reorientation:
    # y = w @ x matches einsum("nchw,oc->nohw", x, w).
    if w_depth.ndim == 4:
        w_depth = w_depth.reshape(C, C)
    if w_inertial.ndim == 4:
        w_inertial = w_inertial.reshape(C, C)

    # NCHW -> (N, C, H*W): pure reshape of contiguous memory, no transpose.
    xd = f_depth.reshape(N, C, HW)
    xi = f_inertial.reshape(N, C, HW)
    bd = b_depth.reshape(C, 1)
    bi = b_inertial.reshape(C, 1)

    # ---- generation-aware VMEM budget -------------------------------------
    try:
        vmem_cap = int(pltpu.get_tpu_info().vmem_capacity_bytes)
    except Exception:
        vmem_cap = 64 * 1024 * 1024                 # v7x per-TC (most restrictive)
    # Scoped limit to request: well under physical on every generation, but far
    # above v5e's 16 MiB scoped default so big tiles keep their double buffers.
    vmem_budget = max(16 * 1024 * 1024,
                      min(int(vmem_cap * 0.7), 64 * 1024 * 1024))

    # Weights + biases, conservatively assumed double-buffered.
    param_bytes = 2 * 2 * (C * C + C) * elem
    # 3 operand classes (xd, xi, out) x 2 pipeline buffers each -> /8 w/ headroom.
    eff_target = min(int(target_tile_bytes),
                     max((vmem_budget - param_bytes) // 8, 128 * C * elem))

    # ---- spatial tile: lane-dense, as large as the target allows ----------
    if HW <= 128 or C * HW * elem <= eff_target:
        blk_hw = HW                                  # take the spatial extent whole
    else:
        blk_hw = min(HW, max(128, (eff_target // (C * elem)) // 128 * 128))

    # ---- batch block: only when one spatial block already covers H*W ------
    nb = 1
    if blk_hw == HW and N > 1:
        per_image = C * HW * elem
        nb_cap = int(min(max_batch_block, max(1, eff_target // max(per_image, 1))))
        nb = _largest_divisor_not_above(N, nb_cap)   # avoid ragged batch blocks

    grid = (pl.cdiv(N, nb), pl.cdiv(HW, blk_hw))

    out_flat = pl.pallas_call(
        gaf_kernel,
        out_shape=jax.ShapeDtypeStruct((N, C, HW), dtype),
        grid_spec=pltpu.PrefetchScalarGridSpec(
            num_scalar_prefetch=0,
            grid=grid,
            in_specs=[
                pl.BlockSpec((nb, C, blk_hw), lambda n, s: (n, 0, s)),   # xd tile
                pl.BlockSpec((nb, C, blk_hw), lambda n, s: (n, 0, s)),   # xi tile
                pl.BlockSpec((C, C), lambda n, s: (0, 0)),               # w_depth
                pl.BlockSpec((C, C), lambda n, s: (0, 0)),               # w_inertial
                pl.BlockSpec((C, 1), lambda n, s: (0, 0)),               # b_depth
                pl.BlockSpec((C, 1), lambda n, s: (0, 0)),               # b_inertial
            ],
            out_specs=pl.BlockSpec((nb, C, blk_hw), lambda n, s: (n, 0, s)),
        ),
        compiler_params=pltpu.CompilerParams(
            dimension_semantics=("parallel", "parallel"),
            vmem_limit_bytes=vmem_budget),
    )(xd, xi, w_depth, w_inertial, bd, bi)

    # (N, C, H*W) -> (N, C, H, W): free reshape.
    return out_flat.reshape(N, C, H, W)


def _reference(f_depth, f_inertial, w_depth, b_depth, w_inertial, b_inertial):
    # Pure-JAX reference in f32 (1x1 conv == channel matmul).
    f_d = f_depth.astype(jnp.float32)
    f_i = f_inertial.astype(jnp.float32)

    def conv1x1(x, w, b):
        y = jnp.einsum("nchw,oc->nohw", x, w.astype(jnp.float32))
        return y + b.astype(jnp.float32)[None, :, None, None]

    gd = jax.nn.sigmoid(conv1x1(f_d, w_depth, b_depth))
    gi = jax.nn.sigmoid(conv1x1(f_i, w_inertial, b_inertial))
    return f_d * gd + f_i * gi


def _make_inputs(key, N, C, H, W, dtype):
    # Values are snapped to bf16-representable numbers so the correctness check
    # is insensitive to the MXU's default f32-matmul precision (bf16-input passes):
    # bf16*bf16 products are exact in f32, leaving only accumulation-order noise.
    def snap(a):
        return a.astype(jnp.bfloat16).astype(dtype)

    k = jax.random.split(key, 6)
    f_depth = snap(jax.random.normal(k[0], (N, C, H, W), jnp.float32))
    f_inertial = snap(jax.random.normal(k[1], (N, C, H, W), jnp.float32))
    # nn.Conv2d default init: uniform in [-1/sqrt(fan_in), 1/sqrt(fan_in)].
    bound = 1.0 / float(jnp.sqrt(jnp.float32(C)))
    w_depth = snap(jax.random.uniform(k[2], (C, C), jnp.float32, -bound, bound))
    b_depth = snap(jax.random.uniform(k[3], (C,), jnp.float32, -bound, bound))
    w_inertial = snap(jax.random.uniform(k[4], (C, C), jnp.float32, -bound, bound))
    b_inertial = snap(jax.random.uniform(k[5], (C,), jnp.float32, -bound, bound))
    return f_depth, f_inertial, w_depth, b_depth, w_inertial, b_inertial


if __name__ == "__main__":
    key = jax.random.PRNGKey(0)
    k1, k2, k3 = jax.random.split(key, 3)

    # 1) Module's natural small shapes (f32): exercises batch blocking (nb=2).
    args = _make_inputs(k1, 2, 4, 16, 16, jnp.float32)
    out = jax.block_until_ready(gaf_block(*args))
    ref = _reference(*args)
    assert out.shape == (2, 4, 16, 16)
    assert jnp.allclose(out, ref, atol=1e-4, rtol=1e-4)

    # 2) Multi-block spatial grid with a ragged last block (small forced tiles).
    args = _make_inputs(k2, 2, 16, 20, 20, jnp.float32)
    out = jax.block_until_ready(gaf_block(*args, target_tile_bytes=16 * 1024))
    ref = _reference(*args)
    assert jnp.allclose(out, ref, atol=1e-4, rtol=1e-4)

    # 3) bf16 I/O path (halves HBM bytes; gate math stays f32 in-kernel).
    args = _make_inputs(k3, 2, 8, 16, 16, jnp.bfloat16)
    out = jax.block_until_ready(gaf_block(*args))
    ref = _reference(*args)
    assert out.dtype == jnp.bfloat16
    assert jnp.allclose(out.astype(jnp.float32), ref, atol=2e-2, rtol=2e-2)

    print("KERNEL_OK")
</pallas_src>

<mosaic_0001>
module attributes {stable_mosaic.version = 11 : i64} {
  func.func @gaf_kernel(%arg0: i32, %arg1: i32, %arg2: memref<2x4x256xf32, #tpu.memory_space<vmem>>, %arg3: memref<2x4x256xf32, #tpu.memory_space<vmem>>, %arg4: memref<4x4xf32, #tpu.memory_space<vmem>>, %arg5: memref<4x4xf32, #tpu.memory_space<vmem>>, %arg6: memref<4x1xf32, #tpu.memory_space<vmem>>, %arg7: memref<4x1xf32, #tpu.memory_space<vmem>>, %arg8: memref<2x4x256xf32, #tpu.memory_space<vmem>>) attributes {dimension_semantics = [#tpu.dimension_semantics<parallel>, #tpu.dimension_semantics<parallel>], iteration_bounds = array<i64: 1, 1>, scalar_prefetch = 0 : i64, scratch_operands = 0 : i64, tpu.core_type = #tpu.core_type<tc>, window_params = [{transform_indices = @transform_0, window_bounds = array<i64: 2, 4, 256>}, {transform_indices = @transform_1, window_bounds = array<i64: 2, 4, 256>}, {pipeline_mode = #tpu.pipeline_mode<synchronous>, transform_indices = @transform_2, window_bounds = array<i64: 4, 4>}, {pipeline_mode = #tpu.pipeline_mode<synchronous>, transform_indices = @transform_3, window_bounds = array<i64: 4, 4>}, {pipeline_mode = #tpu.pipeline_mode<synchronous>, transform_indices = @transform_4, window_bounds = array<i64: 4, 1>}, {pipeline_mode = #tpu.pipeline_mode<synchronous>, transform_indices = @transform_5, window_bounds = array<i64: 4, 1>}, {transform_indices = @transform_6, window_bounds = array<i64: 2, 4, 256>}]} {
    %c0 = arith.constant 0 : index
    %c0_0 = arith.constant 0 : index
    %0 = vector.load %arg4[%c0, %c0_0] : memref<4x4xf32, #tpu.memory_space<vmem>>, vector<4x4xf32>
    %c0_1 = arith.constant 0 : index
    %c0_2 = arith.constant 0 : index
    %1 = vector.load %arg5[%c0_1, %c0_2] : memref<4x4xf32, #tpu.memory_space<vmem>>, vector<4x4xf32>
    %c0_3 = arith.constant 0 : index
    %c0_4 = arith.constant 0 : index
    %2 = vector.load %arg6[%c0_3, %c0_4] : memref<4x1xf32, #tpu.memory_space<vmem>>, vector<4x1xf32>
    %c0_5 = arith.constant 0 : index
    %c0_6 = arith.constant 0 : index
    %3 = vector.load %arg7[%c0_5, %c0_6] : memref<4x1xf32, #tpu.memory_space<vmem>>, vector<4x1xf32>
    %c0_7 = arith.constant 0 : index
    %c0_8 = arith.constant 0 : index
    %c0_9 = arith.constant 0 : index
    %4 = vector.load %arg2[%c0_7, %c0_8, %c0_9] : memref<2x4x256xf32, #tpu.memory_space<vmem>>, vector<1x4x256xf32>
    %5 = vector.shape_cast %4 : vector<1x4x256xf32> to vector<4x256xf32>
    %c0_10 = arith.constant 0 : index
    %c0_11 = arith.constant 0 : index
    %c0_12 = arith.constant 0 : index
    %6 = vector.load %arg3[%c0_10, %c0_11, %c0_12] : memref<2x4x256xf32, #tpu.memory_space<vmem>>, vector<1x4x256xf32>
    %7 = vector.shape_cast %6 : vector<1x4x256xf32> to vector<4x256xf32>
    %cst = arith.constant dense<0.000000e+00> : vector<4x256xf32>
    %8 = tpu.matmul %0, %5, %cst {dimension_numbers = #tpu.dot_dimension_numbers<[1], [0], [0], [1], [0, 0, 1, 1], [], []>} : vector<4x4xf32>, vector<4x256xf32>, vector<4x256xf32> -> vector<4x256xf32>
    %9 = vector.broadcast %2 : vector<4x1xf32> to vector<4x256xf32>
    %10 = arith.addf %8, %9 : vector<4x256xf32>
    %cst_13 = arith.constant dense<0.000000e+00> : vector<4x256xf32>
    %11 = tpu.matmul %1, %7, %cst_13 {dimension_numbers = #tpu.dot_dimension_numbers<[1], [0], [0], [1], [0, 0, 1, 1], [], []>} : vector<4x4xf32>, vector<4x256xf32>, vector<4x256xf32> -> vector<4x256xf32>
    %12 = vector.broadcast %3 : vector<4x1xf32> to vector<4x256xf32>
    %13 = arith.addf %11, %12 : vector<4x256xf32>
    %cst_14 = arith.constant 5.000000e-01 : f32
    %14 = vector.broadcast %cst_14 : f32 to vector<4x256xf32>
    %15 = arith.mulf %14, %10 : vector<4x256xf32>
    %16 = math.tanh %15 : vector<4x256xf32>
    %cst_15 = arith.constant 5.000000e-01 : f32
    %17 = vector.broadcast %cst_15 : f32 to vector<4x256xf32>
    %18 = arith.mulf %17, %16 : vector<4x256xf32>
    %cst_16 = arith.constant 5.000000e-01 : f32
    %19 = vector.broadcast %cst_16 : f32 to vector<4x256xf32>
    %20 = arith.addf %18, %19 : vector<4x256xf32>
    %cst_17 = arith.constant 5.000000e-01 : f32
    %21 = vector.broadcast %cst_17 : f32 to vector<4x256xf32>
    %22 = arith.mulf %21, %13 : vector<4x256xf32>
    %23 = math.tanh %22 : vector<4x256xf32>
    %cst_18 = arith.constant 5.000000e-01 : f32
    %24 = vector.broadcast %cst_18 : f32 to vector<4x256xf32>
    %25 = arith.mulf %24, %23 : vector<4x256xf32>
    %cst_19 = arith.constant 5.000000e-01 : f32
    %26 = vector.broadcast %cst_19 : f32 to vector<4x256xf32>
    %27 = arith.addf %25, %26 : vector<4x256xf32>
    %28 = arith.mulf %5, %20 : vector<4x256xf32>
    %29 = arith.mulf %7, %27 : vector<4x256xf32>
    %30 = arith.addf %28, %29 : vector<4x256xf32>
    %c0_20 = arith.constant 0 : index
    %c0_21 = arith.constant 0 : index
    %c0_22 = arith.constant 0 : index
    %31 = vector.load %arg8[%c0_20, %c0_21, %c0_22] : memref<2x4x256xf32, #tpu.memory_space<vmem>>, vector<1x4x256xf32>
    %32 = vector.shape_cast %31 : vector<1x4x256xf32> to vector<4x256xf32>
    %33 = vector.shape_cast %30 : vector<4x256xf32> to vector<1x4x256xf32>
    tpu.vector_store %arg8[%c0_20, %c0_21, %c0_22], %33 {strides = array<i32>} : memref<2x4x256xf32, #tpu.memory_space<vmem>>, vector<1x4x256xf32>,
    %c1 = arith.constant 1 : index
    %c0_23 = arith.constant 0 : index
    %c0_24 = arith.constant 0 : index
    %34 = vector.load %arg2[%c1, %c0_23, %c0_24] : memref<2x4x256xf32, #tpu.memory_space<vmem>>, vector<1x4x256xf32>
    %35 = vector.shape_cast %34 : vector<1x4x256xf32> to vector<4x256xf32>
    %c1_25 = arith.constant 1 : index
    %c0_26 = arith.constant 0 : index
    %c0_27 = arith.constant 0 : index
    %36 = vector.load %arg3[%c1_25, %c0_26, %c0_27] : memref<2x4x256xf32, #tpu.memory_space<vmem>>, vector<1x4x256xf32>
    %37 = vector.shape_cast %36 : vector<1x4x256xf32> to vector<4x256xf32>
    %cst_28 = arith.constant dense<0.000000e+00> : vector<4x256xf32>
    %38 = tpu.matmul %0, %35, %cst_28 {dimension_numbers = #tpu.dot_dimension_numbers<[1], [0], [0], [1], [0, 0, 1, 1], [], []>} : vector<4x4xf32>, vector<4x256xf32>, vector<4x256xf32> -> vector<4x256xf32>
    %39 = vector.broadcast %2 : vector<4x1xf32> to vector<4x256xf32>
    %40 = arith.addf %38, %39 : vector<4x256xf32>
    %cst_29 = arith.constant dense<0.000000e+00> : vector<4x256xf32>
    %41 = tpu.matmul %1, %37, %cst_29 {dimension_numbers = #tpu.dot_dimension_numbers<[1], [0], [0], [1], [0, 0, 1, 1], [], []>} : vector<4x4xf32>, vector<4x256xf32>, vector<4x256xf32> -> vector<4x256xf32>
    %42 = vector.broadcast %3 : vector<4x1xf32> to vector<4x256xf32>
    %43 = arith.addf %41, %42 : vector<4x256xf32>
    %cst_30 = arith.constant 5.000000e-01 : f32
    %44 = vector.broadcast %cst_30 : f32 to vector<4x256xf32>
    %45 = arith.mulf %44, %40 : vector<4x256xf32>
    %46 = math.tanh %45 : vector<4x256xf32>
    %cst_31 = arith.constant 5.000000e-01 : f32
    %47 = vector.broadcast %cst_31 : f32 to vector<4x256xf32>
    %48 = arith.mulf %47, %46 : vector<4x256xf32>
    %cst_32 = arith.constant 5.000000e-01 : f32
    %49 = vector.broadcast %cst_32 : f32 to vector<4x256xf32>
    %50 = arith.addf %48, %49 : vector<4x256xf32>
    %cst_33 = arith.constant 5.000000e-01 : f32
    %51 = vector.broadcast %cst_33 : f32 to vector<4x256xf32>
    %52 = arith.mulf %51, %43 : vector<4x256xf32>
    %53 = math.tanh %52 : vector<4x256xf32>
    %cst_34 = arith.constant 5.000000e-01 : f32
    %54 = vector.broadcast %cst_34 : f32 to vector<4x256xf32>
    %55 = arith.mulf %54, %53 : vector<4x256xf32>
    %cst_35 = arith.constant 5.000000e-01 : f32
    %56 = vector.broadcast %cst_35 : f32 to vector<4x256xf32>
    %57 = arith.addf %55, %56 : vector<4x256xf32>
    %58 = arith.mulf %35, %50 : vector<4x256xf32>
    %59 = arith.mulf %37, %57 : vector<4x256xf32>
    %60 = arith.addf %58, %59 : vector<4x256xf32>
    %c1_36 = arith.constant 1 : index
    %c0_37 = arith.constant 0 : index
    %c0_38 = arith.constant 0 : index
    %61 = vector.load %arg8[%c1_36, %c0_37, %c0_38] : memref<2x4x256xf32, #tpu.memory_space<vmem>>, vector<1x4x256xf32>
    %62 = vector.shape_cast %61 : vector<1x4x256xf32> to vector<4x256xf32>
    %63 = vector.shape_cast %60 : vector<4x256xf32> to vector<1x4x256xf32>
    tpu.vector_store %arg8[%c1_36, %c0_37, %c0_38], %63 {strides = array<i32>} : memref<2x4x256xf32, #tpu.memory_space<vmem>>, vector<1x4x256xf32>,
    return
  }
  func.func @transform_0(%arg0: i32, %arg1: i32) -> (i32, i32, i32) {
    %c0_i32 = arith.constant 0 : i32
    %c0_i32_0 = arith.constant 0 : i32
    return %arg0, %c0_i32, %arg1 : i32, i32, i32
  }
  func.func @transform_1(%arg0: i32, %arg1: i32) -> (i32, i32, i32) {
    %c0_i32 = arith.constant 0 : i32
    %c0_i32_0 = arith.constant 0 : i32
    return %arg0, %c0_i32, %arg1 : i32, i32, i32
  }
  func.func @transform_2(%arg0: i32, %arg1: i32) -> (i32, i32) {
    %c0_i32 = arith.constant 0 : i32
    %c0_i32_0 = arith.constant 0 : i32
    %c0_i32_1 = arith.constant 0 : i32
    return %c0_i32, %c0_i32_0 : i32, i32
  }
  func.func @transform_3(%arg0: i32, %arg1: i32) -> (i32, i32) {
    %c0_i32 = arith.constant 0 : i32
    %c0_i32_0 = arith.constant 0 : i32
    %c0_i32_1 = arith.constant 0 : i32
    return %c0_i32, %c0_i32_0 : i32, i32
  }
  func.func @transform_4(%arg0: i32, %arg1: i32) -> (i32, i32) {
    %c0_i32 = arith.constant 0 : i32
    %c0_i32_0 = arith.constant 0 : i32
    %c0_i32_1 = arith.constant 0 : i32
    return %c0_i32, %c0_i32_0 : i32, i32
  }
  func.func @transform_5(%arg0: i32, %arg1: i32) -> (i32, i32) {
    %c0_i32 = arith.constant 0 : i32
    %c0_i32_0 = arith.constant 0 : i32
    %c0_i32_1 = arith.constant 0 : i32
    return %c0_i32, %c0_i32_0 : i32, i32
  }
  func.func @transform_6(%arg0: i32, %arg1: i32) -> (i32, i32, i32) {
    %c0_i32 = arith.constant 0 : i32
    %c0_i32_0 = arith.constant 0 : i32
    return %arg0, %c0_i32, %arg1 : i32, i32, i32
  }
}

</mosaic_0001>

<bundles_post_ra>
// kernel: tpu_custom_call.1
= control target key start
LH: loop header
LB: loop body
LE: loop exit
PB: predicated region body
PF: predicated region fallthrough
CT: control target
= control target key end

     0   :  { %11 = vsyncpa [#allocation3], 0  ;;  %s581_s0 = inlined_call_operand.hbm [shape: f32[2,4,256], index: 0, kind: input, shape index: {}]   ;;  %s582_s1 = inlined_call_operand.hbm [shape: f32[2,4,256], index: 1, kind: input, shape index: {}]   ;;  %s583_s2 = inlined_call_operand.vmem [shape: f32[4,4], index: 2, kind: input, shape index: {}]   ;;  %s584_s3 = inlined_call_operand.vmem [shape: f32[4,4], index: 3, kind: input, shape index: {}]   ;;  %s585_s4 = inlined_call_operand.vmem [shape: f32[4,1], index: 4, kind: input, shape index: {}]   ;;  %s586_s5 = inlined_call_operand.vmem [shape: f32[4,1], index: 5, kind: input, shape index: {}]   ;;  %s587_s6 = inlined_call_operand.hbm [shape: f32[2,4,256], index: 6, kind: output, shape index: {}]  }
   0x1   :  { %12 = vsyncpa [#allocation6], 0 }
   0x2   :  { %13 = vsyncpa [#allocation4], 0  ;;  %s18_s23 = sshll.u32 %s581_s0, 4  ;;  %s474_s24 = smov [#allocation2]   ;;  %s19_s23 = int_to_ptr.hbm [resolvable:$true] %s18_s23 }
   0x3   :  { %s20_s25 = sshll.u32 %s474_s24, 4  ;;  %s31_s28 = sshll.u32 %s582_s1, 4  ;;  %s21_s25 = int_to_ptr.vmem [resolvable:$true] %s20_s25  ;;  %s32_s28 = int_to_ptr.hbm [resolvable:$true] %s31_s28 }
   0x4   :  { %s475_s29 = smov 128   ;;  %s476_s30 = smov 8  }
   0x5   :  { %26 = dma.hbm_to_vmem [thread:$0]  %s19_s23, 256, %s21_s25, [#allocation3], %s475_s29, %s475_s29, %s476_s30  }
   0x6   :  { %s477_s7 = smov [#allocation5]  }
   0x7   :  { %s33_s8 = sshll.u32 %s477_s7, 4  ;;  %s34_s8 = int_to_ptr.vmem [resolvable:$true] %s33_s8 }
   0x8   :  { %39 = dma.hbm_to_vmem [thread:$0]  %s32_s28, 256, %s34_s8, [#allocation6], %s475_s29, %s475_s29, %s476_s30  }
   0x9   :  { %468 = dma.done.wait [#allocation3], 256  }
   0xa   :  { %469 = vsyncadd [#allocation3], 4294967040 }
   0xb   :  { %470 = dma.done.wait [#allocation6], 256  }
   0xc   :  { %471 = vsyncadd [#allocation6], 4294967040  ;;  %v527_v0 = vld [vmem:[#allocation2] sm:$0xff]  ;;  %v478_v1 = vmov 0   ;;  %v58_v2 = vld [vmem:[%s585_s4] sm:$0xf] }
   0xd   :  { %379 = vset.pattern.permute.xlu0 %v478_v1  ;;  %68 = vst [vmem:[#allocation1] ss:$2 sm:$0xff] %v527_v0  ;;  %v533_v3 = vld [vmem:[#allocation5] sm:$0xff]  ;;  %vm75_vm0 = vcmask 1043456   ;;  %vm71_vm1 = vcmask 31744   ;;  %v546_v8 = vld [vmem:[#allocation2 + $0x8] sm:$0xff] }
   0xe   :  { %64 = vperm.xlu0 %379, %v58_v2   ;;  %v56_v4 = vld [vmem:[%s583_s2] sm:$0xf]  ;;  %s343_s15 = sshll.u32 %s587_s6, 4  ;;  %s344_s15 = int_to_ptr.hbm [resolvable:$true] %s343_s15 }
   0xf   :  { %v59_v5 = vld [vmem:[%s586_s5] sm:$0xf] }
  0x10   :  { %v57_v9 = vld [vmem:[%s584_s3] sm:$0xf]  ;;  %s479_s3 = smov [#allocation7]  }
  0x11   :  { %v556_v12 = vld [vmem:[#allocation5 + $0x8] sm:$0xff]  ;;  %s341_s5 = sshll.u32 %s479_s3, 4  ;;  %s342_s5 = int_to_ptr.vmem [resolvable:$true] %s341_s5 }
  0x14   :  { %v69_v6 = vld.sshfl [vmem:[#allocation1] sm:$0xff pattern:$0x75316420]  ;;  %v70_v7 = vld.sshfl [vmem:[#allocation1 + $0x8] sm:$0xff pattern:$0x75316420] }
  0x15   :  { %126 = vst [vmem:[#allocation1] ss:$2 sm:$0xff] %v533_v3  ;;  %359 = vmatpush.msk.msra.mxu1 %vm75_vm0, %v70_v7  ;;  %357 = vmatpush.msk.msra.mxu0 %vm75_vm0, %v69_v6 }
  0x16   :  { %360 = vmatmul.msk.f32.vlgmr.msra.gmra.mxu1 %vm71_vm1, %v56_v4  ;;  %358 = vmatmul.msk.f32.vlgmr.msra.gmra.mxu0 %vm71_vm1, %v56_v4 }
  0x17   :  { %122 = vperm.xlu0 %379, %v59_v5  }
  0x1c   :  { %v127_v10 = vld.sshfl [vmem:[#allocation1] sm:$0xff pattern:$0x75316420]  ;;  %v128_v11 = vld.sshfl [vmem:[#allocation1 + $0x8] sm:$0xff pattern:$0x75316420] }
  0x1d   :  { %361 = vmatpush.msk.msra.mxu2 %vm75_vm0, %v127_v10  ;;  %363 = vmatpush.msk.msra.mxu3 %vm75_vm0, %v128_v11  ;;  %211 = vst [vmem:[#allocation1] ss:$2 sm:$0xff] %v546_v8 }
  0x1e   :  { %362 = vmatmul.msk.f32.vlgmr.msra.gmra.mxu2 %vm71_vm1, %v57_v9  ;;  %364 = vmatmul.msk.f32.vlgmr.msra.gmra.mxu3 %vm71_vm1, %v57_v9 }
  0x24   :  { %v212_v13 = vld.sshfl [vmem:[#allocation1] sm:$0xff pattern:$0x75316420]  ;;  %v213_v14 = vld.sshfl [vmem:[#allocation1 + $0x8] sm:$0xff pattern:$0x75316420] }
  0x25   :  { %259 = vst [vmem:[#allocation1] ss:$2 sm:$0xff] %v556_v12  ;;  %367 = vmatpush.msk.msrb.mxu1 %vm75_vm0, %v213_v14  ;;  %365 = vmatpush.msk.msrb.mxu0 %vm75_vm0, %v212_v13 }
  0x26   :  { %368 = vmatmul.msk.f32.vlgmr.msrb.gmra.mxu1 %vm71_vm1, %v56_v4  ;;  %366 = vmatmul.msk.f32.vlgmr.msrb.gmra.mxu0 %vm71_vm1, %v56_v4 }
  0x2c   :  { %v260_v15 = vld.sshfl [vmem:[#allocation1] sm:$0xff pattern:$0x75316420]  ;;  %v261_v16 = vld.sshfl [vmem:[#allocation1 + $0x8] sm:$0xff pattern:$0x75316420] }
  0x2d   :  { %369 = vmatpush.msk.msrb.mxu2 %vm75_vm0, %v260_v15  ;;  %371 = vmatpush.msk.msrb.mxu3 %vm75_vm0, %v261_v16 }
  0x2e   :  { %370 = vmatmul.msk.f32.vlgmr.msrb.gmra.mxu2 %vm71_vm1, %v57_v9  ;;  %372 = vmatmul.msk.f32.vlgmr.msrb.gmra.mxu3 %vm71_vm1, %v57_v9 }
  0x80   :  { %v65_v17 = vpop.permute.xlu0 %64 }
  0x89   :  { %v123_v24 = vpop.permute.xlu0 %122 }
  0x93   :  { %v117_v18 = vpop.f32.mrf.mxu1  ;;  %v97_v20 = vpop.f32.mrf.mxu0 }
  0x94   :  { %v118_v19 = vadd.f32 %v117_v18, %v65_v17  ;;  %v98_v22 = vadd.f32 %v97_v20, %v65_v17 }
  0x96   :  { %v177_v21 = vmul.f32 0.5, %v118_v19  ;;  %v176_v23 = vmul.f32 0.5, %v98_v22 }
  0x98   :  { %380 = vtanh.f32 %v177_v21 }
  0x99   :  { %382 = vtanh.f32 %v176_v23 }
  0x9e   :  { %v381_v25 = vpop.eup %380 }
  0x9f   :  { %v181_v31 = vmul.f32 0.5, %v381_v25  ;;  %v383_v34 = vpop.eup %382 }
  0xa0   :  { %v180_v38 = vmul.f32 0.5, %v383_v34 }
  0xa1   :  { %v153_v26 = vpop.f32.mrf.mxu2  ;;  %v173_v27 = vpop.f32.mrf.mxu3  ;;  %v183_v37 = vadd.f32 0.5, %v181_v31 }
  0xa2   :  { %v154_v28 = vadd.f32 %v153_v26, %v123_v24  ;;  %v174_v29 = vadd.f32 %v173_v27, %v123_v24  ;;  %v182_v43 = vadd.f32 0.5, %v180_v38 }
  0xa3   :  { %v255_v30 = vpop.f32.mrf.mxu1  ;;  %v235_v36 = vpop.f32.mrf.mxu0  ;;  %v194_v42 = vrot.slane %v183_v37, 4 }
  0xa4   :  { %v184_v32 = vmul.f32 0.5, %v154_v28  ;;  %v185_v33 = vmul.f32 0.5, %v174_v29  ;;  %v256_v35 = vadd.f32 %v255_v30, %v65_v17  ;;  %v236_v40 = vadd.f32 %v235_v36, %v65_v17 }
  0xa5   :  { %v195_v48 = vsel %vm75_vm0, %v182_v43, %v194_v42 }
  0xa6   :  { %384 = vtanh.f32 %v184_v32  ;;  %v307_v39 = vmul.f32 0.5, %v256_v35  ;;  %v306_v46 = vmul.f32 0.5, %v236_v40  ;;  %v197_v57 = vmul.f32 %v195_v48, %v527_v0 }
  0xa7   :  { %386 = vtanh.f32 %v185_v33 }
  0xa8   :  { %388 = vtanh.f32 %v307_v39 }
  0xa9   :  { %390 = vtanh.f32 %v306_v46 }
  0xac   :  { %v385_v41 = vpop.eup %384 }
  0xad   :  { %v387_v44 = vpop.eup %386  ;;  %v188_v45 = vmul.f32 0.5, %v385_v41 }
  0xae   :  { %v189_v47 = vmul.f32 0.5, %v387_v44  ;;  %v389_v56 = vpop.eup %388 }
  0xaf   :  { %v190_v49 = vadd.f32 0.5, %v188_v45  ;;  %v311_v62 = vmul.f32 0.5, %v389_v56  ;;  %v391_v63 = vpop.eup %390 }
  0xb0   :  { %v191_v50 = vadd.f32 0.5, %v189_v47  ;;  %v310_v4 = vmul.f32 0.5, %v391_v63 }
  0xb1   :  { %v283_v51 = vpop.f32.mrf.mxu2  ;;  %v303_v52 = vpop.f32.mrf.mxu3  ;;  %v313_v2 = vadd.f32 0.5, %v311_v62 }
  0xb2   :  { %v200_v53 = vrot.slane %v191_v50, 4  ;;  %v284_v54 = vadd.f32 %v283_v51, %v123_v24  ;;  %v304_v55 = vadd.f32 %v303_v52, %v123_v24  ;;  %v312_v9 = vadd.f32 0.5, %v310_v4 }
  0xb3   :  { %v324_v7 = vrot.slane %v313_v2, 4 }
  0xb4   :  { %v314_v58 = vmul.f32 0.5, %v284_v54  ;;  %v315_v59 = vmul.f32 0.5, %v304_v55  ;;  %v201_v60 = vsel %vm75_vm0, %v190_v49, %v200_v53 }
  0xb5   :  { %v203_v61 = vmul.f32 %v201_v60, %v533_v3  ;;  %v325_v13 = vsel %vm75_vm0, %v312_v9, %v324_v7 }
  0xb6   :  { %392 = vtanh.f32 %v314_v58  ;;  %v327_v16 = vmul.f32 %v325_v13, %v546_v8 }
  0xb7   :  { %394 = vtanh.f32 %v315_v59  ;;  %v204_v1 = vadd.f32 %v203_v61, %v197_v57 }
  0xb9   :  { %205 = vst [vmem:[#allocation7] sm:$0xff] %v204_v1 }
  0xbc   :  { %v393_v5 = vpop.eup %392 }
  0xbd   :  { %v395_v6 = vpop.eup %394  ;;  %v318_v10 = vmul.f32 0.5, %v393_v5 }
  0xbe   :  { %v319_v0 = vmul.f32 0.5, %v395_v6 }
  0xbf   :  { %v320_v14 = vadd.f32 0.5, %v318_v10 }
  0xc0   :  { %v321_v11 = vadd.f32 0.5, %v319_v0 }
  0xc2   :  { %v330_v15 = vrot.slane %v321_v11, 4 }
  0xc4   :  { %v331_v3 = vsel %vm75_vm0, %v320_v14, %v330_v15 }
  0xc5   :  { %v333_v17 = vmul.f32 %v331_v3, %v556_v12 }
  0xc7   :  { %v334_v18 = vadd.f32 %v333_v17, %v327_v16 }
  0xc9   :  { %336 = vst [vmem:[#allocation7 + $0x8] sm:$0xff] %v334_v18 }
  0xca   :  { %349 = dma.vmem_to_hbm [thread:$0]  %s342_s5, 256, %s344_s15, [#allocation4], %s475_s29, %s475_s29, %s476_s30  }
  0xcb   :  { %472 = dma.done.wait [#allocation4], 256  }
  0xcc   :  { %473 = vsyncadd [#allocation4], 4294967040 }
  0xcd   :  { %354 = vsyncpa [#allocation3], 1 }
  0xce   :  { %355 = vsyncpa [#allocation6], 1 }
  0xcf   :  { %356 = vsyncpa [#allocation4], 1 }

</bundles_post_ra>
